<compile_context>
chip_gen: v5e
topology: v5e:2x2
jax: 0.10.0
libtpu: 0.0.40
codegen_flags: <defaults>
</compile_context>

<pallas_src>
import functools
import math

import jax
import jax.numpy as jnp
from jax.experimental import pallas as pl
from jax.experimental.pallas import tpu as pltpu


def _round_up(x, m):
    return ((x + m - 1) // m) * m


# --------------------------------------------------------------------------- kernel
def _transformer_kernel(x_ref, we_ref, be_ref, wqkv_ref, bqkv_ref,
                        wo_ref, bo_ref, w1_ref, b1_ref, w2_ref, b2_ref,
                        o_ref, ctx_sc, *, num_heads, head_dim_p, hidden_p, seq_len):
    rows = x_ref.shape[0]                     # rows = Bblk * S (flat token rows)
    bblk = rows // seq_len
    Hp = hidden_p

    # ---- embedding: Linear(input_size, hidden) (padded, lane-dense) -----------
    emb = (jnp.dot(x_ref[...], we_ref[...], preferred_element_type=jnp.float32)
           + be_ref[...]).astype(jnp.bfloat16)                       # (rows, Hp)

    # ---- fused QKV: one (rows,Hp)@(Hp,3Hp) matmul; scale folded into Wq/bq ----
    qkv = (jnp.dot(emb, wqkv_ref[...], preferred_element_type=jnp.float32)
           + bqkv_ref[...]).astype(jnp.bfloat16)                     # cast slab once
    qkv = qkv.reshape(bblk, seq_len, 3 * Hp)
    q = qkv[:, :, :Hp]
    k = qkv[:, :, Hp:2 * Hp]
    v = qkv[:, :, 2 * Hp:]

    # ---- multi-head attention; per-head context assembled lane-dense ----------
    # TODO(synk): attention dropout skipped (eval-mode semantics => identity).
    for h in range(num_heads):                # static unroll; heads are static lane slices
        sl = slice(h * head_dim_p, (h + 1) * head_dim_p)
        s = jnp.einsum('bqd,bkd->bqk', q[:, :, sl], k[:, :, sl],
                       preferred_element_type=jnp.float32)           # (Bblk, S, S) f32
        m = jnp.max(s, axis=-1, keepdims=True)
        e = jnp.exp(s - m)                                           # EUP
        p = (e * pl.reciprocal(jnp.sum(e, axis=-1, keepdims=True), approx=True)
             ).astype(jnp.bfloat16)                                  # EUP recip, VPU mul
        ctx_h = jnp.einsum('bqk,bkd->bqd', p, v[:, :, sl],
                           preferred_element_type=jnp.float32)       # (Bblk, S, hd_p)
        ctx_sc[:, sl] = ctx_h.reshape(rows, head_dim_p)

    # ---- single K=Hp out-projection (one matmul, bias added once) --------------
    attn = (jnp.dot(ctx_sc[...].astype(jnp.bfloat16), wo_ref[...],
                    preferred_element_type=jnp.float32) + bo_ref[...])

    # ---- feed forward: Linear -> ReLU -> Linear --------------------------------
    h1 = jnp.maximum(jnp.dot(attn.astype(jnp.bfloat16), w1_ref[...],
                             preferred_element_type=jnp.float32) + b1_ref[...], 0.0)
    out = (jnp.dot(h1.astype(jnp.bfloat16), w2_ref[...],
                   preferred_element_type=jnp.float32) + b2_ref[...])
    o_ref[...] = out.astype(o_ref.dtype)


# --------------------------------------------------------------------------- host-side weight prep
def _pad_plain(w, b, in_p, out_p):
    """Torch-layout (out,in) weight -> ((in_p,out_p) bf16, (1,out_p) f32), zero-padded."""
    out_f, in_f = w.shape
    wp = jnp.zeros((in_p, out_p), jnp.float32).at[:in_f, :out_f].set(w.T)
    bp = jnp.zeros((1, out_p), jnp.float32).at[:, :out_f].set(b.reshape(1, out_f))
    return wp.astype(jnp.bfloat16), bp


def _pad_head_out(w, b, in_p, num_heads, hd, hd_p):
    """Head-blocked zero padding on OUTPUT features (Wq/Wk/Wv): head h -> cols [h*hd_p, h*hd_p+hd)."""
    out_f, in_f = w.shape
    wt = w.T.reshape(in_f, num_heads, hd)
    wp = jnp.zeros((in_p, num_heads, hd_p), jnp.float32).at[:in_f, :, :hd].set(wt)
    bp = jnp.zeros((1, num_heads, hd_p), jnp.float32).at[0, :, :hd].set(b.reshape(num_heads, hd))
    return (wp.reshape(in_p, num_heads * hd_p).astype(jnp.bfloat16),
            bp.reshape(1, num_heads * hd_p))


def _pad_head_in(w, b, out_p, num_heads, hd, hd_p):
    """Head-blocked zero padding on INPUT features (Wo): row h*hd_p+d <- original row h*hd+d."""
    out_f, in_f = w.shape
    wt = w.T.reshape(num_heads, hd, out_f)
    wp = jnp.zeros((num_heads, hd_p, out_p), jnp.float32).at[:, :hd, :out_f].set(wt)
    bp = jnp.zeros((1, out_p), jnp.float32).at[:, :out_f].set(b.reshape(1, out_f))
    return wp.reshape(num_heads * hd_p, out_p).astype(jnp.bfloat16), bp


def _choose_block_batch(B, S, Din_p, Hp, num_heads, vmem_limit_bytes):
    """Batch elements per grid step: ~512 token rows, VMEM-budgeted, rows_blk % 16 == 0."""
    per_row = (2 * 2 * Din_p            # bf16 input block, double-buffered
               + 2 * 4 * Hp             # f32 output block, double-buffered
               + (4 + 2) * 3 * Hp       # fused qkv (f32 accum + bf16 copy)
               + 6 * 4 * Hp             # emb / ctx scratch / attn / h1 intermediates
               + num_heads * 4 * S)     # per-head (S, S) score rows
    weight_bytes = 2 * (2 * (Din_p * Hp + 6 * Hp * Hp) + 4 * 8 * Hp)
    budget = max(vmem_limit_bytes // 2 - weight_bytes, 16 * per_row)
    rows_cap = max(16, budget // per_row)
    target_rows = int(min(512, rows_cap))            # 512: safe for v5e, near HBM roofline

    bblk = max(1, min(B, pl.cdiv(target_rows, S)))
    align = 16 // math.gcd(S, 16)                    # bf16 sublane tiling on the input block
    bblk = pl.cdiv(bblk, align) * align
    # v7x megacore: prefer >= 2 grid steps so both TensorCores get work (no-op on v5e/v6e).
    if pl.cdiv(B, bblk) == 1 and bblk % (2 * align) == 0:
        bblk //= 2
    return bblk


# --------------------------------------------------------------------------- wrapper
def transformer_forward(adjacency_matrix, params, *, num_heads):
    """adjacency_matrix: (B, S, input_size) f32. Returns (B, S, hidden) f32."""
    x = adjacency_matrix
    B, S, Din = x.shape
    H = params["we"].shape[0]
    head_dim = H // num_heads

    # Lane-dense padded sizes.  Hp must be a multiple of 128 and of num_heads.
    Din_p = _round_up(Din, 128)
    Hp = _round_up(H, 128)
    while Hp % num_heads:
        Hp += 128
    hd_p = Hp // num_heads

    # ---- host-side weight prep (free): padded, (in,out) layout, fused QKV, bf16 ----
    scale = 1.0 / math.sqrt(head_dim)
    we, be = _pad_plain(params["we"], params["be"], Din_p, Hp)
    wq, bq = _pad_head_out(params["wq"] * scale, params["bq"] * scale, Hp, num_heads, head_dim, hd_p)
    wk, bk = _pad_head_out(params["wk"], params["bk"], Hp, num_heads, head_dim, hd_p)
    wv, bv = _pad_head_out(params["wv"], params["bv"], Hp, num_heads, head_dim, hd_p)
    wqkv = jnp.concatenate([wq, wk, wv], axis=1)                      # (Hp, 3Hp) bf16
    bqkv = jnp.concatenate([bq, bk, bv], axis=1)                      # (1, 3Hp)  f32
    wo, bo = _pad_head_in(params["wo"], params["bo"], Hp, num_heads, head_dim, hd_p)
    w1, b1 = _pad_plain(params["w1"], params["b1"], Hp, Hp)
    w2, b2 = _pad_plain(params["w2"], params["b2"], Hp, Hp)

    # VMEM scoped limit: ~75% of physical (≈96 MiB on v5e/v6e, ≈48 MiB on v7x).
    try:
        vmem_phys = int(pltpu.get_tpu_info().vmem_capacity_bytes)
    except Exception:
        vmem_phys = 64 * 1024 * 1024
    vmem_limit = max(32 * 1024 * 1024, min((vmem_phys * 3) // 4, 96 * 1024 * 1024))

    # ---- batch blocking + whole-batch-element zero padding --------------------
    Bblk = _choose_block_batch(B, S, Din_p, Hp, num_heads, vmem_limit)
    Bpad = pl.cdiv(B, Bblk) * Bblk
    rows_blk = Bblk * S
    rows_total = Bpad * S
    grid = (Bpad // Bblk,)

    # bf16 input slab, padded to (Bpad*S, Din_p); padded rows/cols are zero and discarded.
    x_flat = jnp.zeros((rows_total, Din_p), jnp.bfloat16)
    x_flat = x_flat.at[:B * S, :Din].set(x.reshape(B * S, Din).astype(jnp.bfloat16))

    weights = [we, be, wqkv, bqkv, wo, bo, w1, b1, w2, b2]
    w_specs = [pl.BlockSpec(w.shape, lambda b: (0, 0)) for w in weights]

    kernel = functools.partial(_transformer_kernel, num_heads=num_heads,
                               head_dim_p=hd_p, hidden_p=Hp, seq_len=S)

    # Advisory scheduler hint (padded dims).
    flops = 2 * rows_total * (Din_p * Hp + 6 * Hp * Hp) + 4 * Bpad * S * S * Hp
    bytes_accessed = (int(x_flat.size) * 2
                      + sum(int(w.size) * w.dtype.itemsize for w in weights)
                      + rows_total * Hp * 4)
    cost = pl.CostEstimate(flops=int(flops),
                           transcendentals=int(Bpad * num_heads * S * S),
                           bytes_accessed=int(bytes_accessed))

    out_flat = pl.pallas_call(
        kernel,
        out_shape=jax.ShapeDtypeStruct((rows_total, Hp), jnp.float32),
        grid_spec=pltpu.PrefetchScalarGridSpec(
            num_scalar_prefetch=0,
            grid=grid,
            in_specs=[pl.BlockSpec((rows_blk, Din_p), lambda b: (b, 0))] + w_specs,
            out_specs=pl.BlockSpec((rows_blk, Hp), lambda b: (b, 0)),
            scratch_shapes=[pltpu.VMEM((rows_blk, Hp), jnp.float32)],   # lane-dense ctx slab
        ),
        compiler_params=pltpu.CompilerParams(
            dimension_semantics=("parallel",),
            vmem_limit_bytes=int(vmem_limit)),
        cost_estimate=cost,
    )(x_flat, *weights)

    return out_flat[:B * S, :H].reshape(B, S, H)


# --------------------------------------------------------------------------- params & reference
def make_params(key, input_size, hidden_size, num_layers):
    """Deterministic parameter init mirroring the PyTorch module's shapes (f32 canonical).
    Only the LAST attention layer's weights matter (earlier layers are dead code in the
    reference forward: their outputs are overwritten, not chained)."""
    keys = jax.random.split(key, 8 + 2 * num_layers)
    std = 0.05

    def w(k, shape):
        return jax.random.normal(k, shape, dtype=jnp.float32) * std

    H = hidden_size
    in_proj_w = w(keys[6 + 2 * (num_layers - 1)], (3 * H, H))       # (3H, H)
    in_proj_b = w(keys[7 + 2 * (num_layers - 1)], (1, 3 * H))       # (1, 3H)

    params = {
        "we": w(keys[0], (H, input_size)),   # adjacency_embedding.weight
        "be": w(keys[1], (1, H)),            # adjacency_embedding.bias
        "wq": in_proj_w[:H],
        "bq": in_proj_b[:, :H],
        "wk": in_proj_w[H:2 * H],
        "bk": in_proj_b[:, H:2 * H],
        "wv": in_proj_w[2 * H:],
        "bv": in_proj_b[:, 2 * H:],
        "wo": w(keys[2], (H, H)),            # out_proj.weight
        "bo": w(keys[3], (1, H)),            # out_proj.bias
        "w1": w(keys[4], (H, H)),            # feed_forward[0].weight
        "b1": w(keys[5], (1, H)),            # feed_forward[0].bias
        "w2": w(keys[6], (H, H)),            # feed_forward[2].weight
        "b2": w(keys[7], (1, H)),            # feed_forward[2].bias
    }
    return params


def reference_forward(x, params, *, num_heads):
    """Pure-JAX f32 reference mirroring the PyTorch forward (eval mode)."""
    H = params["we"].shape[0]
    hd = H // num_heads
    emb = x @ params["we"].T + params["be"][0]                        # (B, S, H)
    q = emb @ params["wq"].T + params["bq"][0]
    k = emb @ params["wk"].T + params["bk"][0]
    v = emb @ params["wv"].T + params["bv"][0]
    B, S, _ = q.shape
    qh = q.reshape(B, S, num_heads, hd).transpose(0, 2, 1, 3) / math.sqrt(hd)
    kh = k.reshape(B, S, num_heads, hd).transpose(0, 2, 1, 3)
    vh = v.reshape(B, S, num_heads, hd).transpose(0, 2, 1, 3)
    scores = jnp.einsum("bhqd,bhkd->bhqk", qh, kh)
    probs = jax.nn.softmax(scores, axis=-1)
    attn = jnp.einsum("bhqk,bhkd->bhqd", probs, vh)
    attn = attn.transpose(0, 2, 1, 3).reshape(B, S, H)
    attn = attn @ params["wo"].T + params["bo"][0]
    h1 = jnp.maximum(attn @ params["w1"].T + params["b1"][0], 0.0)
    return h1 @ params["w2"].T + params["b2"][0]


if __name__ == "__main__":
    # Small shapes consistent with the module's forward.
    B, S = 2, 8
    input_size, hidden_size = 16, 32
    num_layers, num_heads = 2, 4

    key = jax.random.PRNGKey(0)
    k_x, k_p = jax.random.split(key)

    adjacency_matrix = jax.random.normal(k_x, (B, S, input_size), dtype=jnp.float32)
    # reconstructed_graph is unused by the reference forward; omitted.
    params = make_params(k_p, input_size, hidden_size, num_layers)

    out = transformer_forward(adjacency_matrix, params, num_heads=num_heads)
    out = jax.block_until_ready(out)

    ref = reference_forward(adjacency_matrix, params, num_heads=num_heads)
    assert out.shape == (B, S, hidden_size)
    # bf16 MXU operands with f32 accumulation -> loosened tolerance vs pure-f32 reference.
    assert jnp.max(jnp.abs(out - ref)) < 2e-2

    print("KERNEL_OK")
</pallas_src>

<mosaic_0001>
module attributes {stable_mosaic.version = 11 : i64} {
  func.func @_transformer_kernel(%arg0: i32, %arg1: memref<16x128xbf16, #tpu.memory_space<vmem>>, %arg2: memref<128x128xbf16, #tpu.memory_space<vmem>>, %arg3: memref<1x128xf32, #tpu.memory_space<vmem>>, %arg4: memref<128x384xbf16, #tpu.memory_space<vmem>>, %arg5: memref<1x384xf32, #tpu.memory_space<vmem>>, %arg6: memref<128x128xbf16, #tpu.memory_space<vmem>>, %arg7: memref<1x128xf32, #tpu.memory_space<vmem>>, %arg8: memref<128x128xbf16, #tpu.memory_space<vmem>>, %arg9: memref<1x128xf32, #tpu.memory_space<vmem>>, %arg10: memref<128x128xbf16, #tpu.memory_space<vmem>>, %arg11: memref<1x128xf32, #tpu.memory_space<vmem>>, %arg12: memref<16x128xf32, #tpu.memory_space<vmem>>, %arg13: memref<16x128xf32, #tpu.memory_space<vmem>>) attributes {dimension_semantics = [#tpu.dimension_semantics<parallel>], iteration_bounds = array<i64: 1>, scalar_prefetch = 0 : i64, scratch_operands = 1 : i64, tpu.core_type = #tpu.core_type<tc>, window_params = [{transform_indices = @transform_0, window_bounds = array<i64: 16, 128>}, {pipeline_mode = #tpu.pipeline_mode<synchronous>, transform_indices = @transform_1, window_bounds = array<i64: 128, 128>}, {pipeline_mode = #tpu.pipeline_mode<synchronous>, transform_indices = @transform_2, window_bounds = array<i64: 1, 128>}, {pipeline_mode = #tpu.pipeline_mode<synchronous>, transform_indices = @transform_3, window_bounds = array<i64: 128, 384>}, {pipeline_mode = #tpu.pipeline_mode<synchronous>, transform_indices = @transform_4, window_bounds = array<i64: 1, 384>}, {pipeline_mode = #tpu.pipeline_mode<synchronous>, transform_indices = @transform_5, window_bounds = array<i64: 128, 128>}, {pipeline_mode = #tpu.pipeline_mode<synchronous>, transform_indices = @transform_6, window_bounds = array<i64: 1, 128>}, {pipeline_mode = #tpu.pipeline_mode<synchronous>, transform_indices = @transform_7, window_bounds = array<i64: 128, 128>}, {pipeline_mode = #tpu.pipeline_mode<synchronous>, transform_indices = @transform_8, window_bounds = array<i64: 1, 128>}, {pipeline_mode = #tpu.pipeline_mode<synchronous>, transform_indices = @transform_9, window_bounds = array<i64: 128, 128>}, {pipeline_mode = #tpu.pipeline_mode<synchronous>, transform_indices = @transform_10, window_bounds = array<i64: 1, 128>}, {transform_indices = @transform_11, window_bounds = array<i64: 16, 128>}]} {
    %c0 = arith.constant 0 : index
    %c0_0 = arith.constant 0 : index
    %0 = vector.load %arg1[%c0, %c0_0] : memref<16x128xbf16, #tpu.memory_space<vmem>>, vector<16x128xbf16>
    %c0_1 = arith.constant 0 : index
    %c0_2 = arith.constant 0 : index
    %1 = vector.load %arg2[%c0_1, %c0_2] : memref<128x128xbf16, #tpu.memory_space<vmem>>, vector<128x128xbf16>
    %cst = arith.constant dense<0.000000e+00> : vector<16x128xf32>
    %2 = tpu.matmul %0, %1, %cst {dimension_numbers = #tpu.dot_dimension_numbers<[1], [0], [0], [1], [0, 0, 1, 1], [], []>} : vector<16x128xbf16>, vector<128x128xbf16>, vector<16x128xf32> -> vector<16x128xf32>
    %c0_3 = arith.constant 0 : index
    %c0_4 = arith.constant 0 : index
    %3 = vector.load %arg3[%c0_3, %c0_4] : memref<1x128xf32, #tpu.memory_space<vmem>>, vector<1x128xf32>
    %4 = vector.broadcast %3 : vector<1x128xf32> to vector<16x128xf32>
    %5 = arith.addf %2, %4 : vector<16x128xf32>
    %6 = arith.truncf %5 : vector<16x128xf32> to vector<16x128xbf16>
    %c0_5 = arith.constant 0 : index
    %c0_6 = arith.constant 0 : index
    %7 = vector.load %arg4[%c0_5, %c0_6] : memref<128x384xbf16, #tpu.memory_space<vmem>>, vector<128x384xbf16>
    %cst_7 = arith.constant dense<0.000000e+00> : vector<16x384xf32>
    %8 = tpu.matmul %6, %7, %cst_7 {dimension_numbers = #tpu.dot_dimension_numbers<[1], [0], [0], [1], [0, 0, 1, 1], [], []>} : vector<16x128xbf16>, vector<128x384xbf16>, vector<16x384xf32> -> vector<16x384xf32>
    %c0_8 = arith.constant 0 : index
    %c0_9 = arith.constant 0 : index
    %9 = vector.load %arg5[%c0_8, %c0_9] : memref<1x384xf32, #tpu.memory_space<vmem>>, vector<1x384xf32>
    %10 = vector.broadcast %9 : vector<1x384xf32> to vector<16x384xf32>
    %11 = arith.addf %8, %10 : vector<16x384xf32>
    %12 = arith.truncf %11 : vector<16x384xf32> to vector<16x384xbf16>
    %13 = vector.shape_cast %12 : vector<16x384xbf16> to vector<2x8x384xbf16>
    %14 = vector.extract_strided_slice %13 {offsets = [0, 0, 0], sizes = [2, 8, 128], strides = [1, 1, 1]} : vector<2x8x384xbf16> to vector<2x8x128xbf16>
    %15 = vector.extract_strided_slice %13 {offsets = [0, 0, 128], sizes = [2, 8, 128], strides = [1, 1, 1]} : vector<2x8x384xbf16> to vector<2x8x128xbf16>
    %16 = vector.extract_strided_slice %13 {offsets = [0, 0, 256], sizes = [2, 8, 128], strides = [1, 1, 1]} : vector<2x8x384xbf16> to vector<2x8x128xbf16>
    %17 = vector.extract_strided_slice %14 {offsets = [0, 0, 0], sizes = [2, 8, 32], strides = [1, 1, 1]} : vector<2x8x128xbf16> to vector<2x8x32xbf16>
    %18 = vector.extract_strided_slice %15 {offsets = [0, 0, 0], sizes = [2, 8, 32], strides = [1, 1, 1]} : vector<2x8x128xbf16> to vector<2x8x32xbf16>
    "tpu.trace_start"() <{level = 10 : i32, message = "bqd,bkd->bqk"}> : () -> ()
    %cst_10 = arith.constant dense<0.000000e+00> : vector<2x8x8xf32>
    %19 = tpu.matmul %17, %18, %cst_10 {dimension_numbers = #tpu.dot_dimension_numbers<[2], [2], [1], [1], [0, 0, 0, 1, 1, 1], [0], [0]>} : vector<2x8x32xbf16>, vector<2x8x32xbf16>, vector<2x8x8xf32> -> vector<2x8x8xf32>
    "tpu.trace_stop"() : () -> ()
    %cst_11 = arith.constant dense<0xFF800000> : vector<2x8xf32>
    %20 = vector.multi_reduction <maximumf>, %19, %cst_11 [2] : vector<2x8x8xf32> to vector<2x8xf32>
    %21 = vector.shape_cast %20 : vector<2x8xf32> to vector<2x8x1xf32>
    %22 = vector.broadcast %21 : vector<2x8x1xf32> to vector<2x8x8xf32>
    %23 = arith.subf %19, %22 : vector<2x8x8xf32>
    %24 = math.exp %23 : vector<2x8x8xf32>
    %cst_12 = arith.constant dense<0.000000e+00> : vector<2x8xf32>
    %25 = vector.multi_reduction <add>, %24, %cst_12 [2] : vector<2x8x8xf32> to vector<2x8xf32>
    %26 = vector.shape_cast %25 : vector<2x8xf32> to vector<2x8x1xf32>
    %27 = tpu.reciprocal %26 {approx = true} : vector<2x8x1xf32> -> vector<2x8x1xf32>
    %28 = vector.broadcast %27 : vector<2x8x1xf32> to vector<2x8x8xf32>
    %29 = arith.mulf %24, %28 : vector<2x8x8xf32>
    %30 = arith.truncf %29 : vector<2x8x8xf32> to vector<2x8x8xbf16>
    %31 = vector.extract_strided_slice %16 {offsets = [0, 0, 0], sizes = [2, 8, 32], strides = [1, 1, 1]} : vector<2x8x128xbf16> to vector<2x8x32xbf16>
    "tpu.trace_start"() <{level = 10 : i32, message = "bqk,bkd->bqd"}> : () -> ()
    %cst_13 = arith.constant dense<0.000000e+00> : vector<2x8x32xf32>
    %32 = tpu.matmul %30, %31, %cst_13 {dimension_numbers = #tpu.dot_dimension_numbers<[2], [1], [1], [2], [0, 0, 0, 1, 1, 2], [0], [0]>} : vector<2x8x8xbf16>, vector<2x8x32xbf16>, vector<2x8x32xf32> -> vector<2x8x32xf32>
    "tpu.trace_stop"() : () -> ()
    %33 = vector.shape_cast %32 : vector<2x8x32xf32> to vector<16x32xf32>
    %c0_14 = arith.constant 0 : index
    %c0_15 = arith.constant 0 : index
    %34 = vector.load %arg13[%c0_14, %c0_15] : memref<16x128xf32, #tpu.memory_space<vmem>>, vector<16x32xf32>
    tpu.vector_store %arg13[%c0_14, %c0_15], %33 {strides = array<i32>} : memref<16x128xf32, #tpu.memory_space<vmem>>, vector<16x32xf32>,
    %35 = vector.extract_strided_slice %14 {offsets = [0, 0, 32], sizes = [2, 8, 32], strides = [1, 1, 1]} : vector<2x8x128xbf16> to vector<2x8x32xbf16>
    %36 = vector.extract_strided_slice %15 {offsets = [0, 0, 32], sizes = [2, 8, 32], strides = [1, 1, 1]} : vector<2x8x128xbf16> to vector<2x8x32xbf16>
    "tpu.trace_start"() <{level = 10 : i32, message = "bqd,bkd->bqk"}> : () -> ()
    %cst_16 = arith.constant dense<0.000000e+00> : vector<2x8x8xf32>
    %37 = tpu.matmul %35, %36, %cst_16 {dimension_numbers = #tpu.dot_dimension_numbers<[2], [2], [1], [1], [0, 0, 0, 1, 1, 1], [0], [0]>} : vector<2x8x32xbf16>, vector<2x8x32xbf16>, vector<2x8x8xf32> -> vector<2x8x8xf32>
    "tpu.trace_stop"() : () -> ()
    %cst_17 = arith.constant dense<0xFF800000> : vector<2x8xf32>
    %38 = vector.multi_reduction <maximumf>, %37, %cst_17 [2] : vector<2x8x8xf32> to vector<2x8xf32>
    %39 = vector.shape_cast %38 : vector<2x8xf32> to vector<2x8x1xf32>
    %40 = vector.broadcast %39 : vector<2x8x1xf32> to vector<2x8x8xf32>
    %41 = arith.subf %37, %40 : vector<2x8x8xf32>
    %42 = math.exp %41 : vector<2x8x8xf32>
    %cst_18 = arith.constant dense<0.000000e+00> : vector<2x8xf32>
    %43 = vector.multi_reduction <add>, %42, %cst_18 [2] : vector<2x8x8xf32> to vector<2x8xf32>
    %44 = vector.shape_cast %43 : vector<2x8xf32> to vector<2x8x1xf32>
    %45 = tpu.reciprocal %44 {approx = true} : vector<2x8x1xf32> -> vector<2x8x1xf32>
    %46 = vector.broadcast %45 : vector<2x8x1xf32> to vector<2x8x8xf32>
    %47 = arith.mulf %42, %46 : vector<2x8x8xf32>
    %48 = arith.truncf %47 : vector<2x8x8xf32> to vector<2x8x8xbf16>
    %49 = vector.extract_strided_slice %16 {offsets = [0, 0, 32], sizes = [2, 8, 32], strides = [1, 1, 1]} : vector<2x8x128xbf16> to vector<2x8x32xbf16>
    "tpu.trace_start"() <{level = 10 : i32, message = "bqk,bkd->bqd"}> : () -> ()
    %cst_19 = arith.constant dense<0.000000e+00> : vector<2x8x32xf32>
    %50 = tpu.matmul %48, %49, %cst_19 {dimension_numbers = #tpu.dot_dimension_numbers<[2], [1], [1], [2], [0, 0, 0, 1, 1, 2], [0], [0]>} : vector<2x8x8xbf16>, vector<2x8x32xbf16>, vector<2x8x32xf32> -> vector<2x8x32xf32>
    "tpu.trace_stop"() : () -> ()
    %51 = vector.shape_cast %50 : vector<2x8x32xf32> to vector<16x32xf32>
    %c0_20 = arith.constant 0 : index
    %c32 = arith.constant 32 : index
    %52 = vector.load %arg13[%c0_20, %c32] : memref<16x128xf32, #tpu.memory_space<vmem>>, vector<16x32xf32>
    tpu.vector_store %arg13[%c0_20, %c32], %51 {strides = array<i32>} : memref<16x128xf32, #tpu.memory_space<vmem>>, vector<16x32xf32>,
    %53 = vector.extract_strided_slice %14 {offsets = [0, 0, 64], sizes = [2, 8, 32], strides = [1, 1, 1]} : vector<2x8x128xbf16> to vector<2x8x32xbf16>
    %54 = vector.extract_strided_slice %15 {offsets = [0, 0, 64], sizes = [2, 8, 32], strides = [1, 1, 1]} : vector<2x8x128xbf16> to vector<2x8x32xbf16>
    "tpu.trace_start"() <{level = 10 : i32, message = "bqd,bkd->bqk"}> : () -> ()
    %cst_21 = arith.constant dense<0.000000e+00> : vector<2x8x8xf32>
    %55 = tpu.matmul %53, %54, %cst_21 {dimension_numbers = #tpu.dot_dimension_numbers<[2], [2], [1], [1], [0, 0, 0, 1, 1, 1], [0], [0]>} : vector<2x8x32xbf16>, vector<2x8x32xbf16>, vector<2x8x8xf32> -> vector<2x8x8xf32>
    "tpu.trace_stop"() : () -> ()
    %cst_22 = arith.constant dense<0xFF800000> : vector<2x8xf32>
    %56 = vector.multi_reduction <maximumf>, %55, %cst_22 [2] : vector<2x8x8xf32> to vector<2x8xf32>
    %57 = vector.shape_cast %56 : vector<2x8xf32> to vector<2x8x1xf32>
    %58 = vector.broadcast %57 : vector<2x8x1xf32> to vector<2x8x8xf32>
    %59 = arith.subf %55, %58 : vector<2x8x8xf32>
    %60 = math.exp %59 : vector<2x8x8xf32>
    %cst_23 = arith.constant dense<0.000000e+00> : vector<2x8xf32>
    %61 = vector.multi_reduction <add>, %60, %cst_23 [2] : vector<2x8x8xf32> to vector<2x8xf32>
    %62 = vector.shape_cast %61 : vector<2x8xf32> to vector<2x8x1xf32>
    %63 = tpu.reciprocal %62 {approx = true} : vector<2x8x1xf32> -> vector<2x8x1xf32>
    %64 = vector.broadcast %63 : vector<2x8x1xf32> to vector<2x8x8xf32>
    %65 = arith.mulf %60, %64 : vector<2x8x8xf32>
    %66 = arith.truncf %65 : vector<2x8x8xf32> to vector<2x8x8xbf16>
    %67 = vector.extract_strided_slice %16 {offsets = [0, 0, 64], sizes = [2, 8, 32], strides = [1, 1, 1]} : vector<2x8x128xbf16> to vector<2x8x32xbf16>
    "tpu.trace_start"() <{level = 10 : i32, message = "bqk,bkd->bqd"}> : () -> ()
    %cst_24 = arith.constant dense<0.000000e+00> : vector<2x8x32xf32>
    %68 = tpu.matmul %66, %67, %cst_24 {dimension_numbers = #tpu.dot_dimension_numbers<[2], [1], [1], [2], [0, 0, 0, 1, 1, 2], [0], [0]>} : vector<2x8x8xbf16>, vector<2x8x32xbf16>, vector<2x8x32xf32> -> vector<2x8x32xf32>
    "tpu.trace_stop"() : () -> ()
    %69 = vector.shape_cast %68 : vector<2x8x32xf32> to vector<16x32xf32>
    %c0_25 = arith.constant 0 : index
    %c64 = arith.constant 64 : index
    %70 = vector.load %arg13[%c0_25, %c64] : memref<16x128xf32, #tpu.memory_space<vmem>>, vector<16x32xf32>
    tpu.vector_store %arg13[%c0_25, %c64], %69 {strides = array<i32>} : memref<16x128xf32, #tpu.memory_space<vmem>>, vector<16x32xf32>,
    %71 = vector.extract_strided_slice %14 {offsets = [0, 0, 96], sizes = [2, 8, 32], strides = [1, 1, 1]} : vector<2x8x128xbf16> to vector<2x8x32xbf16>
    %72 = vector.extract_strided_slice %15 {offsets = [0, 0, 96], sizes = [2, 8, 32], strides = [1, 1, 1]} : vector<2x8x128xbf16> to vector<2x8x32xbf16>
    "tpu.trace_start"() <{level = 10 : i32, message = "bqd,bkd->bqk"}> : () -> ()
    %cst_26 = arith.constant dense<0.000000e+00> : vector<2x8x8xf32>
    %73 = tpu.matmul %71, %72, %cst_26 {dimension_numbers = #tpu.dot_dimension_numbers<[2], [2], [1], [1], [0, 0, 0, 1, 1, 1], [0], [0]>} : vector<2x8x32xbf16>, vector<2x8x32xbf16>, vector<2x8x8xf32> -> vector<2x8x8xf32>
    "tpu.trace_stop"() : () -> ()
    %cst_27 = arith.constant dense<0xFF800000> : vector<2x8xf32>
    %74 = vector.multi_reduction <maximumf>, %73, %cst_27 [2] : vector<2x8x8xf32> to vector<2x8xf32>
    %75 = vector.shape_cast %74 : vector<2x8xf32> to vector<2x8x1xf32>
    %76 = vector.broadcast %75 : vector<2x8x1xf32> to vector<2x8x8xf32>
    %77 = arith.subf %73, %76 : vector<2x8x8xf32>
    %78 = math.exp %77 : vector<2x8x8xf32>
    %cst_28 = arith.constant dense<0.000000e+00> : vector<2x8xf32>
    %79 = vector.multi_reduction <add>, %78, %cst_28 [2] : vector<2x8x8xf32> to vector<2x8xf32>
    %80 = vector.shape_cast %79 : vector<2x8xf32> to vector<2x8x1xf32>
    %81 = tpu.reciprocal %80 {approx = true} : vector<2x8x1xf32> -> vector<2x8x1xf32>
    %82 = vector.broadcast %81 : vector<2x8x1xf32> to vector<2x8x8xf32>
    %83 = arith.mulf %78, %82 : vector<2x8x8xf32>
    %84 = arith.truncf %83 : vector<2x8x8xf32> to vector<2x8x8xbf16>
    %85 = vector.extract_strided_slice %16 {offsets = [0, 0, 96], sizes = [2, 8, 32], strides = [1, 1, 1]} : vector<2x8x128xbf16> to vector<2x8x32xbf16>
    "tpu.trace_start"() <{level = 10 : i32, message = "bqk,bkd->bqd"}> : () -> ()
    %cst_29 = arith.constant dense<0.000000e+00> : vector<2x8x32xf32>
    %86 = tpu.matmul %84, %85, %cst_29 {dimension_numbers = #tpu.dot_dimension_numbers<[2], [1], [1], [2], [0, 0, 0, 1, 1, 2], [0], [0]>} : vector<2x8x8xbf16>, vector<2x8x32xbf16>, vector<2x8x32xf32> -> vector<2x8x32xf32>
    "tpu.trace_stop"() : () -> ()
    %87 = vector.shape_cast %86 : vector<2x8x32xf32> to vector<16x32xf32>
    %c0_30 = arith.constant 0 : index
    %c96 = arith.constant 96 : index
    %88 = vector.load %arg13[%c0_30, %c96] : memref<16x128xf32, #tpu.memory_space<vmem>>, vector<16x32xf32>
    tpu.vector_store %arg13[%c0_30, %c96], %87 {strides = array<i32>} : memref<16x128xf32, #tpu.memory_space<vmem>>, vector<16x32xf32>,
    %c0_31 = arith.constant 0 : index
    %c0_32 = arith.constant 0 : index
    %89 = vector.load %arg13[%c0_31, %c0_32] : memref<16x128xf32, #tpu.memory_space<vmem>>, vector<16x128xf32>
    %90 = arith.truncf %89 : vector<16x128xf32> to vector<16x128xbf16>
    %c0_33 = arith.constant 0 : index
    %c0_34 = arith.constant 0 : index
    %91 = vector.load %arg6[%c0_33, %c0_34] : memref<128x128xbf16, #tpu.memory_space<vmem>>, vector<128x128xbf16>
    %cst_35 = arith.constant dense<0.000000e+00> : vector<16x128xf32>
    %92 = tpu.matmul %90, %91, %cst_35 {dimension_numbers = #tpu.dot_dimension_numbers<[1], [0], [0], [1], [0, 0, 1, 1], [], []>} : vector<16x128xbf16>, vector<128x128xbf16>, vector<16x128xf32> -> vector<16x128xf32>
    %c0_36 = arith.constant 0 : index
    %c0_37 = arith.constant 0 : index
    %93 = vector.load %arg7[%c0_36, %c0_37] : memref<1x128xf32, #tpu.memory_space<vmem>>, vector<1x128xf32>
    %94 = vector.broadcast %93 : vector<1x128xf32> to vector<16x128xf32>
    %95 = arith.addf %92, %94 : vector<16x128xf32>
    %96 = arith.truncf %95 : vector<16x128xf32> to vector<16x128xbf16>
    %c0_38 = arith.constant 0 : index
    %c0_39 = arith.constant 0 : index
    %97 = vector.load %arg8[%c0_38, %c0_39] : memref<128x128xbf16, #tpu.memory_space<vmem>>, vector<128x128xbf16>
    %cst_40 = arith.constant dense<0.000000e+00> : vector<16x128xf32>
    %98 = tpu.matmul %96, %97, %cst_40 {dimension_numbers = #tpu.dot_dimension_numbers<[1], [0], [0], [1], [0, 0, 1, 1], [], []>} : vector<16x128xbf16>, vector<128x128xbf16>, vector<16x128xf32> -> vector<16x128xf32>
    %c0_41 = arith.constant 0 : index
    %c0_42 = arith.constant 0 : index
    %99 = vector.load %arg9[%c0_41, %c0_42] : memref<1x128xf32, #tpu.memory_space<vmem>>, vector<1x128xf32>
    %100 = vector.broadcast %99 : vector<1x128xf32> to vector<16x128xf32>
    %101 = arith.addf %98, %100 : vector<16x128xf32>
    %cst_43 = arith.constant 0.000000e+00 : f32
    %102 = vector.broadcast %cst_43 : f32 to vector<16x128xf32>
    %103 = arith.maximumf %101, %102 : vector<16x128xf32>
    %104 = arith.truncf %103 : vector<16x128xf32> to vector<16x128xbf16>
    %c0_44 = arith.constant 0 : index
    %c0_45 = arith.constant 0 : index
    %105 = vector.load %arg10[%c0_44, %c0_45] : memref<128x128xbf16, #tpu.memory_space<vmem>>, vector<128x128xbf16>
    %cst_46 = arith.constant dense<0.000000e+00> : vector<16x128xf32>
    %106 = tpu.matmul %104, %105, %cst_46 {dimension_numbers = #tpu.dot_dimension_numbers<[1], [0], [0], [1], [0, 0, 1, 1], [], []>} : vector<16x128xbf16>, vector<128x128xbf16>, vector<16x128xf32> -> vector<16x128xf32>
    %c0_47 = arith.constant 0 : index
    %c0_48 = arith.constant 0 : index
    %107 = vector.load %arg11[%c0_47, %c0_48] : memref<1x128xf32, #tpu.memory_space<vmem>>, vector<1x128xf32>
    %108 = vector.broadcast %107 : vector<1x128xf32> to vector<16x128xf32>
    %109 = arith.addf %106, %108 : vector<16x128xf32>
    %c0_49 = arith.constant 0 : index
    %c0_50 = arith.constant 0 : index
    %110 = vector.load %arg12[%c0_49, %c0_50] : memref<16x128xf32, #tpu.memory_space<vmem>>, vector<16x128xf32>
    tpu.vector_store %arg12[%c0_49, %c0_50], %109 {strides = array<i32>} : memref<16x128xf32, #tpu.memory_space<vmem>>, vector<16x128xf32>,
    return
  }
  func.func @transform_0(%arg0: i32) -> (i32, i32) {
    %c0_i32 = arith.constant 0 : i32
    %c0_i32_0 = arith.constant 0 : i32
    return %arg0, %c0_i32 : i32, i32
  }
  func.func @transform_1(%arg0: i32) -> (i32, i32) {
    %c0_i32 = arith.constant 0 : i32
    %c0_i32_0 = arith.constant 0 : i32
    %c0_i32_1 = arith.constant 0 : i32
    return %c0_i32, %c0_i32_0 : i32, i32
  }
  func.func @transform_2(%arg0: i32) -> (i32, i32) {
    %c0_i32 = arith.constant 0 : i32
    %c0_i32_0 = arith.constant 0 : i32
    %c0_i32_1 = arith.constant 0 : i32
    return %c0_i32, %c0_i32_0 : i32, i32
  }
  func.func @transform_3(%arg0: i32) -> (i32, i32) {
    %c0_i32 = arith.constant 0 : i32
    %c0_i32_0 = arith.constant 0 : i32
    %c0_i32_1 = arith.constant 0 : i32
    return %c0_i32, %c0_i32_0 : i32, i32
  }
  func.func @transform_4(%arg0: i32) -> (i32, i32) {
    %c0_i32 = arith.constant 0 : i32
    %c0_i32_0 = arith.constant 0 : i32
    %c0_i32_1 = arith.constant 0 : i32
    return %c0_i32, %c0_i32_0 : i32, i32
  }
  func.func @transform_5(%arg0: i32) -> (i32, i32) {
    %c0_i32 = arith.constant 0 : i32
    %c0_i32_0 = arith.constant 0 : i32
    %c0_i32_1 = arith.constant 0 : i32
    return %c0_i32, %c0_i32_0 : i32, i32
  }
  func.func @transform_6(%arg0: i32) -> (i32, i32) {
    %c0_i32 = arith.constant 0 : i32
    %c0_i32_0 = arith.constant 0 : i32
    %c0_i32_1 = arith.constant 0 : i32
    return %c0_i32, %c0_i32_0 : i32, i32
  }
  func.func @transform_7(%arg0: i32) -> (i32, i32) {
    %c0_i32 = arith.constant 0 : i32
    %c0_i32_0 = arith.constant 0 : i32
    %c0_i32_1 = arith.constant 0 : i32
    return %c0_i32, %c0_i32_0 : i32, i32
  }
  func.func @transform_8(%arg0: i32) -> (i32, i32) {
    %c0_i32 = arith.constant 0 : i32
    %c0_i32_0 = arith.constant 0 : i32
    %c0_i32_1 = arith.constant 0 : i32
    return %c0_i32, %c0_i32_0 : i32, i32
  }
  func.func @transform_9(%arg0: i32) -> (i32, i32) {
    %c0_i32 = arith.constant 0 : i32
    %c0_i32_0 = arith.constant 0 : i32
    %c0_i32_1 = arith.constant 0 : i32
    return %c0_i32, %c0_i32_0 : i32, i32
  }
  func.func @transform_10(%arg0: i32) -> (i32, i32) {
    %c0_i32 = arith.constant 0 : i32
    %c0_i32_0 = arith.constant 0 : i32
    %c0_i32_1 = arith.constant 0 : i32
    return %c0_i32, %c0_i32_0 : i32, i32
  }
  func.func @transform_11(%arg0: i32) -> (i32, i32) {
    %c0_i32 = arith.constant 0 : i32
    %c0_i32_0 = arith.constant 0 : i32
    return %arg0, %c0_i32 : i32, i32
  }
}

</mosaic_0001>

<bundles_post_ra>
// kernel: tpu_custom_call.1
= control target key start
LH: loop header
LB: loop body
LE: loop exit
PB: predicated region body
PF: predicated region fallthrough
CT: control target
= control target key end

     0   :  { %16 = vsyncpa [#allocation4], 0  ;;  %s2002_s0 = inlined_call_operand.hbm [shape: bf16[16,128], index: 0, kind: input, shape index: {}]   ;;  %s2003_s1 = inlined_call_operand.hbm [shape: bf16[128,128], index: 1, kind: input, shape index: {}]   ;;  %s2004_s2 = inlined_call_operand.hbm [shape: f32[1,128], index: 2, kind: input, shape index: {}]   ;;  %s2005_s3 = inlined_call_operand.hbm [shape: bf16[128,384], index: 3, kind: input, shape index: {}]   ;;  %s2006_s4 = inlined_call_operand.vmem [shape: f32[1,384], index: 4, kind: input, shape index: {}]   ;;  %s2007_s5 = inlined_call_operand.hbm [shape: bf16[128,128], index: 5, kind: input, shape index: {}]   ;;  %s2008_s6 = inlined_call_operand.vmem [shape: f32[1,128], index: 6, kind: input, shape index: {}]   ;;  %s2009_s7 = inlined_call_operand.hbm [shape: bf16[128,128], index: 7, kind: input, shape index: {}]   ;;  %s2010_s8 = inlined_call_operand.vmem [shape: f32[1,128], index: 8, kind: input, shape index: {}]   ;;  %s2011_s9 = inlined_call_operand.hbm [shape: bf16[128,128], index: 9, kind: input, shape index: {}]   ;;  %s2012_s10 = inlined_call_operand.vmem [shape: f32[1,128], index: 10, kind: input, shape index: {}]   ;;  %s2013_s11 = inlined_call_operand.hbm [shape: f32[16,128], index: 11, kind: output, shape index: {}]  }
   0x1   :  { %17 = vsyncpa [#allocation7], 0 }
   0x2   :  { %18 = vsyncpa [#allocation10], 0 }
   0x3   :  { %19 = vsyncpa [#allocation13], 0 }
   0x4   :  { %20 = vsyncpa [#allocation5], 0  ;;  %s38_s19 = sshll.u32 %s2003_s1, 4  ;;  %s1778_s20 = smov [#allocation6]   ;;  %s39_s19 = int_to_ptr.hbm [resolvable:$true] %s38_s19 }
   0x5   :  { %s40_s21 = sshll.u32 %s1778_s20, 4  ;;  %s62_s24 = sshll.u32 %s2005_s3, 4  ;;  %s41_s21 = int_to_ptr.vmem [resolvable:$true] %s40_s21  ;;  %s63_s24 = int_to_ptr.hbm [resolvable:$true] %s62_s24 }
   0x6   :  { %s1779_s25 = smov 64   ;;  %s1780_s26 = smov 4  }
   0x7   :  { %46 = dma.hbm_to_vmem [thread:$0]  %s39_s19, 1024, %s41_s21, [#allocation7], %s1779_s25, %s1779_s25, %s1780_s26  }
   0x8   :  { %s1781_s27 = smov [#allocation9]   ;;  %s1782_s29 = smov 192  }
   0x9   :  { %s64_s28 = sshll.u32 %s1781_s27, 4  ;;  %s1783_s1 = smov 12   ;;  %s65_s28 = int_to_ptr.vmem [resolvable:$true] %s64_s28 }
   0xa   :  { %70 = dma.hbm_to_vmem [thread:$0]  %s63_s24, 3072, %s65_s28, [#allocation10], %s1782_s29, %s1782_s29, %s1783_s1  }
   0xb   :  { %s92_s13 = sshll.u32 %s2009_s7, 4  ;;  %s1784_s14 = smov [#allocation12]   ;;  %s93_s13 = int_to_ptr.hbm [resolvable:$true] %s92_s13 }
   0xc   :  { %s94_s3 = sshll.u32 %s1784_s14, 4  ;;  %s25_s17 = sshll.u32 %s2002_s0, 4  ;;  %s95_s3 = int_to_ptr.vmem [resolvable:$true] %s94_s3  ;;  %s26_s17 = int_to_ptr.hbm [resolvable:$true] %s25_s17 }
   0xd   :  { %100 = dma.hbm_to_vmem [thread:$0]  %s93_s13, 1024, %s95_s3, [#allocation13], %s1779_s25, %s1779_s25, %s1780_s26  }
   0xe   :  { %s1785_s18 = smov [#allocation3]   ;;  %s52_s22 = sshll.u32 %s2004_s2, 4  ;;  %s53_s22 = int_to_ptr.hbm [resolvable:$true] %s52_s22 }
   0xf   :  { %s27_s19 = sshll.u32 %s1785_s18, 4  ;;  %s77_s0 = sshll.u32 %s2007_s5, 4  ;;  %s28_s19 = int_to_ptr.vmem [resolvable:$true] %s27_s19  ;;  %s78_s0 = int_to_ptr.hbm [resolvable:$true] %s77_s0 }
  0x10   :  { %33 = dma.hbm_to_vmem [thread:$0]  %s26_s17, 128, %s28_s19, [#allocation4], %s1779_s25, %s1779_s25, %s1780_s26  }
  0x11   :  { %s1786_s24 = smov [#allocation8]   ;;  %s1787_s28 = smov [#allocation11]  }
  0x12   :  { %s54_s27 = sshll.u32 %s1786_s24, 4  ;;  %s79_s29 = sshll.u32 %s1787_s28, 4  ;;  %s55_s27 = int_to_ptr.vmem [resolvable:$true] %s54_s27  ;;  %s80_s29 = int_to_ptr.vmem [resolvable:$true] %s79_s29 }
  0x13   :  { %57 = dma.hbm_to_vmem [thread:$0]  %s53_s22, 16, %s55_s27, [#allocation7]  }
  0x14   :  { %s107_s2 = sshll.u32 %s2011_s9, 4  ;;  %s1788_s12 = smov [#allocation14]   ;;  %s108_s2 = int_to_ptr.hbm [resolvable:$true] %s107_s2 }
  0x15   :  { %85 = dma.hbm_to_vmem [thread:$0]  %s78_s0, 1024, %s80_s29, [#allocation10], %s1779_s25, %s1779_s25, %s1780_s26  }
  0x16   :  { %s109_s13 = sshll.u32 %s1788_s12, 4  ;;  %s110_s13 = int_to_ptr.vmem [resolvable:$true] %s109_s13 }
  0x17   :  { %115 = dma.hbm_to_vmem [thread:$0]  %s108_s2, 1024, %s110_s13, [#allocation13], %s1779_s25, %s1779_s25, %s1780_s26  }
  0x18   :  { %1768 = dma.done.wait [#allocation4], 128  }
  0x19   :  { %1769 = vsyncadd [#allocation4], 4294967168 }
  0x1a   :  { %1770 = dma.done.wait [#allocation7], 1040  }
  0x1b   :  { %1771 = vsyncadd [#allocation7], 4294966256 }
  0x1c   :  { %1772 = dma.done.wait [#allocation10], 4096  }
  0x1d   :  { %1773 = vsyncadd [#allocation10], 4294963200 }
  0x1e   :  { %1774 = dma.done.wait [#allocation13], 2048  }
  0x1f   :  { %1775 = vsyncadd [#allocation13], 4294965248  ;;  %v1475_v0 = vld [vmem:[#allocation6 + $0x38] sm:$0xff]  ;;  %v1474_v1 = vld [vmem:[#allocation6 + $0x30] sm:$0xff]  ;;  %vm523_vm0 = vcmask 1043456   ;;  %vm454_vm1 = vcmask 261120  }
  0x20   :  { %223 = vmatpush.bf16.msra.mxu0 %v1475_v0  ;;  %v1345_v2 = vld [vmem:[#allocation9 + $0xa8] sm:$0xf]  ;;  %v1498_v3 = vld [vmem:[#allocation9 + $0xb0] sm:$0xf0]  ;;  %v1497_v4 = vld [vmem:[#allocation9 + $0xac] sm:$0xf] }
  0x21   :  { %v1473_v5 = vld [vmem:[#allocation6 + $0x28] sm:$0xff]  ;;  %v1346_v6 = vor.u32 %v1498_v3, %v1345_v2  ;;  %v1347_v7 = vld [vmem:[#allocation9 + $0xb4] sm:$0xf0]  ;;  %v1353_v8 = vld [vmem:[#allocation9 + $0xb0] sm:$0xf]  ;;  %s1789_s26 = smov 96  }
  0x22   :  { %v1499_v9 = vld [vmem:[#allocation9 + $0xb8] sm:$0xf0]  ;;  %v1350_v10 = vor.u32 %v1497_v4, %v1347_v7  ;;  %v1333_v12 = vld [vmem:[#allocation9 + $0x90] sm:$0xf]  ;;  %v1494_v14 = vld [vmem:[#allocation9 + $0x94] sm:$0xf] }
  0x23   :  { %v1354_v11 = vor.u32 %v1499_v9, %v1353_v8  ;;  %v1495_v13 = vld [vmem:[#allocation9 + $0x98] sm:$0xf0]  ;;  %406 = vmatpush.bf16.msra.mxu1 %v1346_v6  ;;  %v1335_v16 = vld [vmem:[#allocation9 + $0x9c] sm:$0xf0]  ;;  %v1341_v17 = vld [vmem:[#allocation9 + $0x98] sm:$0xf] }
  0x24   :  { %224 = vmatpush.bf16.msra.mxu0 %v1474_v1  ;;  %v1334_v15 = vor.u32 %v1495_v13, %v1333_v12  ;;  %v1496_v18 = vld [vmem:[#allocation9 + $0xa0] sm:$0xf0]  ;;  %420 = vmatpush.bf16.msra.mxu2 %v1350_v10  ;;  %v1338_v19 = vor.u32 %v1494_v14, %v1335_v16  ;;  %v1321_v21 = vld [vmem:[#allocation9 + $0x78] sm:$0xf]  ;;  %v1491_v23 = vld [vmem:[#allocation9 + $0x7c] sm:$0xf] }
  0x25   :  { %434 = vmatpush.bf16.msra.mxu3 %v1354_v11  ;;  %v1342_v20 = vor.u32 %v1496_v18, %v1341_v17  ;;  %v1492_v22 = vld [vmem:[#allocation9 + $0x80] sm:$0xf0]  ;;  %v1323_v24 = vld [vmem:[#allocation9 + $0x84] sm:$0xf0]  ;;  %v1329_v25 = vld [vmem:[#allocation9 + $0x80] sm:$0xf] }
  0x26   :  { %v1493_v26 = vld [vmem:[#allocation9 + $0x88] sm:$0xf0]  ;;  %v1472_v27 = vld [vmem:[#allocation6 + $0x20] sm:$0xff]  ;;  %v1322_v28 = vor.u32 %v1492_v22, %v1321_v21  ;;  %v1326_v29 = vor.u32 %v1491_v23, %v1323_v24  ;;  %v1311_v34 = vld [vmem:[#allocation9 + $0x6c] sm:$0xf0]  ;;  %vm495_vm2 = vcmask 64512  }
  0x27   :  { %407 = vmatpush.bf16.msra.mxu1 %v1334_v15  ;;  %v1330_v30 = vor.u32 %v1493_v26, %v1329_v25  ;;  %v1309_v31 = vld [vmem:[#allocation9 + $0x60] sm:$0xf]  ;;  %v1489_v32 = vld [vmem:[#allocation9 + $0x68] sm:$0xf0]  ;;  %v1488_v33 = vld [vmem:[#allocation9 + $0x64] sm:$0xf] }
  0x28   :  { %225 = vmatpush.bf16.msra.mxu0 %v1473_v5  ;;  %421 = vmatpush.bf16.msra.mxu2 %v1338_v19  ;;  %v1317_v35 = vld [vmem:[#allocation9 + $0x68] sm:$0xf]  ;;  %v1490_v36 = vld [vmem:[#allocation9 + $0x70] sm:$0xf0]  ;;  %v1310_v38 = vor.u32 %v1489_v32, %v1309_v31  ;;  %v1314_v39 = vor.u32 %v1488_v33, %v1311_v34  ;;  %v1485_v43 = vld [vmem:[#allocation9 + $0x4c] sm:$0xf] }
  0x29   :  { %435 = vmatpush.bf16.msra.mxu3 %v1342_v20  ;;  %v1471_v37 = vld [vmem:[#allocation6 + $0x18] sm:$0xff]  ;;  %v1318_v40 = vor.u32 %v1490_v36, %v1317_v35  ;;  %v1297_v41 = vld [vmem:[#allocation9 + $0x48] sm:$0xf]  ;;  %v1305_v45 = vld [vmem:[#allocation9 + $0x50] sm:$0xf]  ;;  %vm693_vm3 = vcmask 523520  }
  0x2a   :  { %v1486_v42 = vld [vmem:[#allocation9 + $0x50] sm:$0xf0]  ;;  %v1299_v44 = vld [vmem:[#allocation9 + $0x54] sm:$0xf0]  ;;  %v1487_v46 = vld [vmem:[#allocation9 + $0x58] sm:$0xf0] }
  0x2b   :  { %408 = vmatpush.bf16.msra.mxu1 %v1322_v28  ;;  %v1470_v47 = vld [vmem:[#allocation6 + $0x10] sm:$0xff]  ;;  %v1298_v48 = vor.u32 %v1486_v42, %v1297_v41  ;;  %v1302_v49 = vor.u32 %v1485_v43, %v1299_v44  ;;  %v1306_v50 = vor.u32 %v1487_v46, %v1305_v45  ;;  %v1469_v51 = vld [vmem:[#allocation6 + $0x8] sm:$0xff]  ;;  %v1468_v52 = vld [vmem:[#allocation6] sm:$0xff]  ;;  %vm818_vm4 = vcmask 785920   ;;  %s1791_s17 = smov [#allocation15]   ;;  %s1792_s21 = smov 128  }
  0x2c   :  { %226 = vmatpush.bf16.msra.mxu0 %v1472_v27  ;;  %422 = vmatpush.bf16.msra.mxu2 %v1326_v29  ;;  %v1467_v53 = vld [vmem:[#allocation3] sm:$0xff]  ;;  %v1285_v54 = vld [vmem:[#allocation9 + $0x30] sm:$0xf]  ;;  %v1287_v58 = vld [vmem:[#allocation9 + $0x3c] sm:$0xf0]  ;;  %vm943_vm5 = vcmask 1048320  }
  0x2d   :  { %436 = vmatpush.bf16.msra.mxu3 %v1330_v30  ;;  %v1483_v55 = vld [vmem:[#allocation9 + $0x38] sm:$0xf0]  ;;  %v1482_v56 = vld [vmem:[#allocation9 + $0x34] sm:$0xf]  ;;  %v1293_v59 = vld [vmem:[#allocation9 + $0x38] sm:$0xf] }
  0x2e   :  { %v1286_v57 = vor.u32 %v1483_v55, %v1285_v54  ;;  %v1484_v60 = vld [vmem:[#allocation9 + $0x40] sm:$0xf0]  ;;  %v1290_v61 = vor.u32 %v1482_v56, %v1287_v58  ;;  %v1273_v63 = vld [vmem:[#allocation9 + $0x18] sm:$0xf]  ;;  %v1479_v1 = vld [vmem:[#allocation9 + $0x1c] sm:$0xf] }
  0x2f   :  { %409 = vmatpush.bf16.msra.mxu1 %v1310_v38  ;;  %v1294_v62 = vor.u32 %v1484_v60, %v1293_v59  ;;  %v1480_v0 = vld [vmem:[#allocation9 + $0x20] sm:$0xf0]  ;;  %v1275_v3 = vld [vmem:[#allocation9 + $0x24] sm:$0xf0]  ;;  %v1281_v4 = vld [vmem:[#allocation9 + $0x20] sm:$0xf] }
  0x30   :  { %227 = vmatpush.bf16.msra.mxu0 %v1471_v37  ;;  %423 = vmatpush.bf16.msra.mxu2 %v1314_v39  ;;  %v1274_v2 = vor.u32 %v1480_v0, %v1273_v63  ;;  %v1481_v5 = vld [vmem:[#allocation9 + $0x28] sm:$0xf0]  ;;  %v1278_v6 = vor.u32 %v1479_v1, %v1275_v3  ;;  %v1261_v8 = vld [vmem:[#allocation9] sm:$0xf]  ;;  %v1476_v10 = vld [vmem:[#allocation9 + $0x4] sm:$0xf] }
  0x31   :  { %437 = vmatpush.bf16.msra.mxu3 %v1318_v40  ;;  %v1282_v7 = vor.u32 %v1481_v5, %v1281_v4  ;;  %v1477_v9 = vld [vmem:[#allocation9 + $0x8] sm:$0xf0]  ;;  %v1263_v12 = vld [vmem:[#allocation9 + $0xc] sm:$0xf0]  ;;  %v1269_v13 = vld [vmem:[#allocation9 + $0x8] sm:$0xf] }
  0x32   :  { %v1262_v11 = vor.u32 %v1477_v9, %v1261_v8  ;;  %v1478_v14 = vld [vmem:[#allocation9 + $0x10] sm:$0xf0]  ;;  %v1266_v15 = vor.u32 %v1476_v10, %v1263_v12  ;;  %v1540_v18 = vld [vmem:[#allocation8] ss:$0 sm:$0xff]  ;;  %v270_v23 = vld [vmem:[%s2006_s4] sm:$0x7] }
  0x33   :  { %410 = vmatpush.bf16.msra.mxu1 %v1298_v48  ;;  %v1270_v16 = vor.u32 %v1478_v14, %v1269_v13  ;;  %v272_v25 = vperm.slane %v270_v23, 0  ;;  %v273_v26 = vperm.slane %v270_v23, 1  ;;  %v274_v27 = vperm.slane %v270_v23, 2  ;;  %s1790_s4 = smov 32   ;;  %s1205_s18 = sshll.u32 %s1791_s17, 4  ;;  %s1206_s18 = int_to_ptr.vmem [resolvable:$true] %s1205_s18 }
  0x34   :  { %228 = vmatpush.bf16.msra.mxu0 %v1470_v47  ;;  %424 = vmatpush.bf16.msra.mxu2 %v1302_v49  ;;  %s1793_s22 = smov 8  }
  0x35   :  { %438 = vmatpush.bf16.msra.mxu3 %v1306_v50 }
  0x37   :  { %411 = vmatpush.bf16.msra.mxu1 %v1286_v57 }
  0x38   :  { %229 = vmatpush.bf16.msra.mxu0 %v1469_v51  ;;  %425 = vmatpush.bf16.msra.mxu2 %v1290_v61 }
  0x39   :  { %439 = vmatpush.bf16.msra.mxu3 %v1294_v62 }
  0x3b   :  { %412 = vmatpush.bf16.msra.mxu1 %v1274_v2 }
  0x3c   :  { %230 = vmatpush.bf16.msra.mxu0 %v1468_v52  ;;  %426 = vmatpush.bf16.msra.mxu2 %v1278_v6 }
  0x3d   :  { %440 = vmatpush.bf16.msra.mxu3 %v1282_v7 }
  0x3f   :  { %231 = vmatmul.bf16.vlgmr.msra.gmra.mxu0 %v1467_v53  ;;  %413 = vmatpush.bf16.msra.mxu1 %v1262_v11 }
  0x40   :  { %427 = vmatpush.bf16.msra.mxu2 %v1266_v15 }
  0x41   :  { %441 = vmatpush.bf16.msra.mxu3 %v1270_v16 }
  0xbc   :  { %v232_v17 = vpop.f32.mrf.mxu0 }
  0xbd   :  { %v233_v20 = vadd.f32 %v1540_v18, %v232_v17 }
  0xc4   :  { %v234_v19 = vpop.f32.mrf.mxu0 }
  0xc5   :  { %v235_v21 = vadd.f32 %v1540_v18, %v234_v19 }
  0xc7   :  { %v237_v22 = vpack.c.bf16 %v235_v21, %v233_v20 }
  0xc9   :  { %414 = vmatmul.bf16.vlgmr.msra.gmra.mxu1 %v237_v22  ;;  %428 = vmatmul.bf16.vlgmr.msra.gmra.mxu2 %v237_v22 }
  0xca   :  { %442 = vmatmul.bf16.vlgmr.msra.gmra.mxu3 %v237_v22 }
 0x146   :  { %v415_v24 = vpop.f32.mrf.mxu1 }
 0x147   :  { %v416_v29 = vadd.f32 %v415_v24, %v272_v25 }
 0x14c   :  { %v429_v28 = vpop.f32.mrf.mxu2 }
 0x14d   :  { %v430_v30 = vadd.f32 %v429_v28, %v273_v26  ;;  %v443_v31 = vpop.f32.mrf.mxu3 }
 0x14e   :  { %v444_v32 = vadd.f32 %v443_v31, %v274_v27  ;;  %v417_v37 = vpop.f32.mrf.mxu1 }
 0x14f   :  { %v448_v33 = vpack.c.bf16 %v430_v30, %v416_v29  ;;  %v418_v42 = vadd.f32 %v417_v37, %v272_v25 }
 0x150   :  { %v1893_v34 = vpack.c.bf16 %v444_v32, %v444_v32 }
 0x151   :  { %696 = vrot.lane.b32.xlu2 %v448_v33, %s1779_s25  ;;  %561 = vrot.lane.b32.xlu0 %v448_v33, %s1789_s26  ;;  %v453_v35 = vrot.slane %v448_v33, 4  ;;  %v564_v36 = vunpack.c.l.b16 %v448_v33 }
 0x152   :  { %v525_v38 = vsel %vm523_vm0, %v1893_v34, 0 }
 0x153   :  { %534 = vmatpush.bf16.msrb.mxu2 %v525_v38  ;;  %v459_v39 = vsel %vm454_vm1, %v453_v35, 0  ;;  %v565_v40 = vpack.c.b16 %v564_v36, %v564_v36 }
 0x154   :  { %v431_v41 = vpop.f32.mrf.mxu2  ;;  %468 = vmatpush.bf16.xpose.msrb.mxu3 %v459_v39 }
 0x155   :  { %v432_v43 = vadd.f32 %v431_v41, %v273_v26  ;;  %v445_v44 = vpop.f32.mrf.mxu3  ;;  %566 = vrot.lane.b32.xlu1 %v565_v40, %s1789_s26 }
 0x156   :  { %v446_v45 = vadd.f32 %v445_v44, %v274_v27 }
 0x157   :  { %v450_v46 = vpack.c.bf16 %v432_v43, %v418_v42 }
 0x158   :  { %v1901_v47 = vpack.c.bf16 %v446_v45, %v446_v45 }
 0x159   :  { %720 = vrot.lane.b32.xlu2 %v450_v46, %s1779_s25  ;;  %587 = vrot.lane.b32.xlu0 %v450_v46, %s1789_s26  ;;  %v475_v48 = vrot.slane %v450_v46, 4  ;;  %v590_v49 = vunpack.c.l.b16 %v450_v46 }
 0x15a   :  { %v544_v50 = vsel %vm523_vm0, %v1901_v47, 0  ;;  %v662_v41 = vunpack.c.l.b16 %v1901_v47 }
 0x15b   :  { %v480_v51 = vsel %vm454_vm1, %v475_v48, 0  ;;  %v591_v52 = vpack.c.b16 %v590_v49, %v590_v49  ;;  %1355 = vmatmul.msk.bf16.vlgmr.msrb.gmra.mxu3 %vm454_vm1, %v448_v33 }
 0x15c   :  { %553 = vmatpush.bf16.msra.mxu3 %v544_v50  ;;  %489 = vmatpush.bf16.xpose.msrb.mxu1 %v480_v51  ;;  %v1939_v45 = vpack.c.b16 %v662_v41, %v662_v41  ;;  %v638_v50 = vunpack.c.l.b16 %v1893_v34 }
 0x15d   :  { %592 = vrot.lane.b32.xlu1 %v591_v52, %s1789_s26 }
 0x15e   :  { %v639_v51 = vpack.c.b16 %v638_v50, %v638_v50 }
 0x161   :  { %821 = vrot.lane.b32.xlu2 %v448_v33, %s1790_s4  ;;  %699 = vrot.lane.b32.xlu0 %v565_v40, %s1779_s25 }
 0x163   :  { %1356 = vmatmul.msk.bf16.vlgmr.msrb.gmra.mxu1 %vm454_vm1, %v450_v46 }
 0x165   :  { %723 = vrot.lane.b32.xlu1 %v591_v52, %s1779_s25 }
 0x169   :  { %848 = vrot.lane.b32.xlu2 %v591_v52, %s1790_s4  ;;  %845 = vrot.lane.b32.xlu0 %v450_v46, %s1790_s4 }
 0x16d   :  { %824 = vrot.lane.b32.xlu1 %v565_v40, %s1790_s4 }
 0x1ab   :  { %v697_v53 = vpop.permute.xlu2 %696 }
 0x1ac   :  { %v698_v55 = vrot.slane %v697_v53, 4 }
 0x1ae   :  { %v705_v59 = vsel %vm454_vm1, %v698_v55, 0 }
 0x1b3   :  { %v721_v54 = vpop.permute.xlu2 %720 }
 0x1b4   :  { %v722_v62 = vrot.slane %v721_v54, 4 }
 0x1b6   :  { %v729_v4 = vsel %vm454_vm1, %v722_v62, 0 }
 0x1bb   :  { %v822_v60 = vpop.permute.xlu2 %821 }
 0x1bc   :  { %v823_v61 = vrot.slane %v822_v60, 4 }
 0x1be   :  { %v830_v2 = vsel %vm454_vm1, %v823_v61, 0 }
 0x1c3   :  { %v562_v56 = vpop.permute.xlu0 %561  ;;  %v849_v18 = vpop.permute.xlu2 %848 }
 0x1c4   :  { %v563_v57 = vrot.slane %v562_v56, 4 }
 0x1c6   :  { %v572_v58 = vsel %vm454_vm1, %v563_v57, 0 }
 0x1c7   :  { %581 = vmatpush.bf16.xpose.msrb.mxu0 %v572_v58  ;;  %v567_v63 = vpop.permute.xlu1 %566 }
 0x1cb   :  { %v588_v0 = vpop.permute.xlu0 %587 }
 0x1cc   :  { %v589_v1 = vrot.slane %v588_v0, 4 }
 0x1ce   :  { %v598_v3 = vsel %vm454_vm1, %v589_v1, 0  ;;  %1359 = vmatmul.msk.bf16.vlgmr.msrb.gmra.mxu0 %vm454_vm1, %v567_v63 }
 0x1cf   :  { %714 = vmatpush.bf16.xpose.msra.mxu0 %v705_v59  ;;  %607 = vmatpush.bf16.xpose.msra.mxu1 %v598_v3  ;;  %v593_v6 = vpop.permute.xlu1 %592 }
 0x1d3   :  { %v700_v5 = vpop.permute.xlu0 %699 }
 0x1d6   :  { %1360 = vmatmul.msk.bf16.vlgmr.msra.gmra.mxu1 %vm454_vm1, %v593_v6 }
 0x1d7   :  { %839 = vmatpush.bf16.xpose.msrb.mxu0 %v830_v2  ;;  %738 = vmatpush.bf16.xpose.msrb.mxu1 %v729_v4  ;;  %v724_v14 = vpop.permute.xlu1 %723 }
 0x1db   :  { %v846_v7 = vpop.permute.xlu0 %845 }
 0x1dc   :  { %v847_v8 = vrot.slane %v846_v7, 4 }
 0x1de   :  { %v854_v9 = vsel %vm454_vm1, %v847_v8, 0  ;;  %1363 = vmatmul.msk.bf16.vlgmr.msra.gmra.mxu0 %vm454_vm1, %v700_v5  ;;  %v470_v10 = vpop.f32.mrf.mxu3 }
 0x1df   :  { %863 = vmatpush.bf16.xpose.msra.mxu1 %v854_v9  ;;  %v496_v12 = vsel %vm495_vm2, %v470_v10, -inf  ;;  %v825_v17 = vpop.permute.xlu1 %824 }
 0x1e0   :  { %v491_v11 = vpop.f32.mrf.mxu1  ;;  %497 = vmax.xlane.f32.xlu0 %v496_v12 }
 0x1e1   :  { %v499_v13 = vsel %vm495_vm2, %v491_v11, -inf }
 0x1e2   :  { %500 = vmax.xlane.f32.xlu1 %v499_v13 }
 0x1e6   :  { %1364 = vmatmul.msk.bf16.vlgmr.msrb.gmra.mxu1 %vm454_vm1, %v724_v14  ;;  %v472_v15 = vpop.f32.mrf.mxu3 }
 0x1e8   :  { %v493_v16 = vpop.f32.mrf.mxu1 }
 0x1ee   :  { %1367 = vmatmul.msk.bf16.vlgmr.msrb.gmra.mxu0 %vm454_vm1, %v825_v17 }
 0x1f6   :  { %1368 = vmatmul.msk.bf16.vlgmr.msra.gmra.mxu1 %vm454_vm1, %v849_v18 }
 0x24b   :  { %v583_v19 = vpop.f32.mrf.mxu0 }
 0x24c   :  { %v613_v20 = vsel %vm495_vm2, %v583_v19, -inf }
 0x24d   :  { %614 = vmax.xlane.f32.xlu2 %v613_v20 }
 0x253   :  { %v585_v21 = vpop.f32.mrf.mxu0  ;;  %v609_v22 = vpop.f32.mrf.mxu1 }
 0x254   :  { %v498_v23 = vpop.xlane.xlu0 %497  ;;  %v616_v24 = vsel %vm495_vm2, %v609_v22, -inf }
 0x255   :  { %v502_v25 = vsub.f32 %v470_v10, %v498_v23  ;;  %617 = vmax.xlane.f32.xlu2 %v616_v24  ;;  %v501_v26 = vpop.xlane.xlu1 %500 }
 0x256   :  { %v503_v27 = vsub.f32 %v491_v11, %v501_v26 }
 0x257   :  { %v504_v28 = vmul.f32 1.442695, %v502_v25 }
 0x258   :  { %v506_v29 = vmul.f32 1.442695, %v503_v27 }
 0x259   :  { %1544 = vpow2.f32 %v504_v28 }
 0x25a   :  { %1546 = vpow2.f32 %v506_v29 }
 0x25b   :  { %v611_v30 = vpop.f32.mrf.mxu1  ;;  %v716_v31 = vpop.f32.mrf.mxu0 }
 0x25c   :  { %v744_v32 = vsel %vm495_vm2, %v716_v31, -inf }
 0x25d   :  { %745 = vmax.xlane.f32.xlu0 %v744_v32 }
 0x25f   :  { %v1545_v33 = vpop.eup %1544 }
 0x260   :  { %v1547_v35 = vpop.eup %1546  ;;  %v508_v36 = vsel %vm495_vm2, %v1545_v33, 0.0 }
 0x261   :  { %509 = vadd.xlane.f32.xlu1 %v508_v36  ;;  %v511_v37 = vsel %vm495_vm2, %v1547_v35, 0.0 }
 0x262   :  { %512 = vadd.xlane.f32.xlu2 %v511_v37 }
 0x263   :  { %v718_v38 = vpop.f32.mrf.mxu0  ;;  %v740_v39 = vpop.f32.mrf.mxu1 }
 0x264   :  { %v747_v40 = vsel %vm495_vm2, %v740_v39, -inf }
 0x269   :  { %748 = vmax.xlane.f32.xlu1 %v747_v40 }
 0x26b   :  { %v742_v42 = vpop.f32.mrf.mxu1  ;;  %v841_v43 = vpop.f32.mrf.mxu0 }
 0x26c   :  { %v869_v44 = vsel %vm495_vm2, %v841_v43, -inf }
 0x26d   :  { %870 = vmax.xlane.f32.xlu2 %v869_v44 }
 0x271   :  { %664 = vrot.lane.b32.xlu0 %v1939_v45, %s1789_s26 }
 0x273   :  { %v843_v46 = vpop.f32.mrf.mxu0  ;;  %v1943_v48 = vpop.f32.mrf.mxu1 }
 0x274   :  { %v872_v47 = vsel %vm495_vm2, %v1943_v48, -inf }
 0x27b   :  { %v867_v49 = vpop.f32.mrf.mxu1 }
 0x282   :  { %768 = vrot.lane.b32.xlu1 %v639_v51, %s1779_s25 }
 0x285   :  { %640 = vrot.lane.b32.xlu2 %v639_v51, %s1789_s26 }
 0x29b   :  { %873 = vmax.xlane.f32.xlu0 %v872_v47 }
 0x2c0   :  { %v615_v52 = vpop.xlane.xlu2 %614 }
 0x2c1   :  { %v619_v53 = vsub.f32 %v583_v19, %v615_v52 }
 0x2c3   :  { %v621_v54 = vmul.f32 1.442695, %v619_v53 }
 0x2c5   :  { %1548 = vpow2.f32 %v621_v54 }
 0x2c8   :  { %v618_v55 = vpop.xlane.xlu2 %617 }
 0x2c9   :  { %v620_v56 = vsub.f32 %v609_v22, %v618_v55 }
 0x2cb   :  { %v1950_v57 = vpop.eup %1548  ;;  %v623_v58 = vmul.f32 1.442695, %v620_v56 }
 0x2cc   :  { %v625_v34 = vsel %vm495_vm2, %v1950_v57, 0.0 }
 0x2cd   :  { %1550 = vpow2.f32 %v623_v58  ;;  %626 = vadd.xlane.f32.xlu0 %v625_v34 }
 0x2d0   :  { %v746_v59 = vpop.xlane.xlu0 %745 }
 0x2d1   :  { %v750_v60 = vsub.f32 %v716_v31, %v746_v59 }
 0x2d3   :  { %v1551_v61 = vpop.eup %1550  ;;  %v752_v62 = vmul.f32 1.442695, %v750_v60 }
 0x2d4   :  { %v510_v63 = vpop.xlane.xlu1 %509  ;;  %v628_v0 = vsel %vm495_vm2, %v1551_v61, 0.0 }
 0x2d5   :  { %1552 = vpow2.f32 %v752_v62  ;;  %v513_v1 = vpop.xlane.xlu2 %512  ;;  %629 = vadd.xlane.f32.xlu1 %v628_v0 }
 0x2d6   :  { %1554 = vrcp.f32 %v510_v63 }
 0x2d7   :  { %1556 = vrcp.f32 %v513_v1 }
 0x2db   :  { %v1553_v2 = vpop.eup %1552 }
 0x2dc   :  { %v1555_v3 = vpop.eup %1554  ;;  %v749_v4 = vpop.xlane.xlu1 %748  ;;  %v756_v5 = vsel %vm495_vm2, %v1553_v2, 0.0 }
 0x2dd   :  { %v1557_v6 = vpop.eup %1556  ;;  %v516_v7 = vmul.f32 %v1555_v3, %v1545_v33  ;;  %v751_v8 = vsub.f32 %v740_v39, %v749_v4  ;;  %757 = vadd.xlane.f32.xlu1 %v756_v5 }
 0x2de   :  { %v517_v9 = vmul.f32 %v1557_v6, %v1547_v35 }
 0x2df   :  { %v754_v10 = vmul.f32 1.442695, %v751_v8  ;;  %v518_v11 = vpack.c.bf16 %v516_v7, %v516_v7 }
 0x2e0   :  { %v519_v12 = vpack.c.bf16 %v517_v9, %v517_v9  ;;  %v871_v13 = vpop.xlane.xlu2 %870 }
 0x2e1   :  { %1558 = vpow2.f32 %v754_v10  ;;  %1357 = vmatmul.msk.bf16.vlgmr.msrb.gmra.mxu2 %vm495_vm2, %v518_v11  ;;  %v875_v14 = vsub.f32 %v841_v43, %v871_v13  ;;  %789 = vrot.lane.b32.xlu0 %v1939_v45, %s1779_s25 }
 0x2e2   :  { %1358 = vmatmul.msk.bf16.vlgmr.msra.gmra.mxu3 %vm495_vm2, %v519_v12 }
 0x2e3   :  { %v877_v15 = vmul.f32 1.442695, %v875_v14  ;;  %v665_v16 = vpop.permute.xlu0 %664 }
 0x2e4   :  { %v670_v17 = vsel %vm523_vm0, %v665_v16, 0 }
 0x2e5   :  { %1560 = vpow2.f32 %v877_v15  ;;  %679 = vmatpush.bf16.msrb.mxu3 %v670_v17  ;;  %v1507_v15 = vld [vmem:[#allocation11 + $0x38] sm:$0xff]  ;;  %v1506_v17 = vld [vmem:[#allocation11 + $0x30] sm:$0xff] }
 0x2e6   :  { %1017 = vmatpush.bf16.msra.mxu0 %v1507_v15 }
 0x2e7   :  { %v1559_v18 = vpop.eup %1558 }
 0x2e8   :  { %v641_v19 = vpop.permute.xlu2 %640  ;;  %v759_v20 = vsel %vm495_vm2, %v1559_v18, 0.0 }
 0x2e9   :  { %v646_v21 = vsel %vm523_vm0, %v641_v19, 0  ;;  %760 = vadd.xlane.f32.xlu1 %v759_v20  ;;  %v1504_v19 = vld [vmem:[#allocation11 + $0x20] sm:$0xff] }
 0x2ea   :  { %655 = vmatpush.bf16.msra.mxu2 %v646_v21  ;;  %1018 = vmatpush.bf16.msra.mxu0 %v1506_v17  ;;  %v1503_v21 = vld [vmem:[#allocation11 + $0x18] sm:$0xff] }
 0x2eb   :  { %v1561_v22 = vpop.eup %1560 }
 0x2ec   :  { %v881_v23 = vsel %vm495_vm2, %v1561_v22, 0.0 }
 0x2ed   :  { %882 = vadd.xlane.f32.xlu2 %v881_v23 }
 0x2f4   :  { %v769_v24 = vpop.permute.xlu1 %768 }
 0x2f5   :  { %v774_v25 = vsel %vm523_vm0, %v769_v24, 0  ;;  %v1501_v24 = vld [vmem:[#allocation11 + $0x8] sm:$0xff] }
 0x2f6   :  { %783 = vmatpush.bf16.msrb.mxu2 %v774_v25  ;;  %v1500_v25 = vld [vmem:[#allocation11] sm:$0xff] }
 0x302   :  { %893 = vrot.lane.b32.xlu1 %v639_v51, %s1790_s4 }
 0x30a   :  { %914 = vrot.lane.b32.xlu1 %v1939_v45, %s1790_s4 }
 0x30e   :  { %v874_v26 = vpop.xlane.xlu0 %873 }
 0x30f   :  { %v876_v27 = vsub.f32 %v1943_v48, %v874_v26  ;;  %v1515_v26 = vld [vmem:[#allocation12 + $0x38] sm:$0xff] }
 0x310   :  { %1100 = vmatpush.bf16.msrb.mxu1 %v1515_v26 }
 0x311   :  { %v879_v28 = vmul.f32 1.442695, %v876_v27  ;;  %v1514_v27 = vld [vmem:[#allocation12 + $0x30] sm:$0xff] }
 0x313   :  { %1562 = vpow2.f32 %v879_v28  ;;  %v1513_v28 = vld [vmem:[#allocation12 + $0x28] sm:$0xff] }
 0x314   :  { %1101 = vmatpush.bf16.msrb.mxu1 %v1514_v27 }
 0x318   :  { %1102 = vmatpush.bf16.msrb.mxu1 %v1513_v28 }
 0x319   :  { %v1563_v29 = vpop.eup %1562 }
 0x31a   :  { %v884_v30 = vsel %vm495_vm2, %v1563_v29, 0.0 }
 0x31b   :  { %885 = vadd.xlane.f32.xlu0 %v884_v30  ;;  %v1511_v30 = vld [vmem:[#allocation12 + $0x18] sm:$0xff] }
 0x340   :  { %v627_v31 = vpop.xlane.xlu0 %626 }
 0x341   :  { %1564 = vrcp.f32 %v627_v31 }
 0x347   :  { %v1565_v32 = vpop.eup %1564 }
 0x348   :  { %v633_v33 = vmul.f32 %v1565_v32, %v1950_v57  ;;  %v630_v35 = vpop.xlane.xlu1 %629 }
 0x349   :  { %1566 = vrcp.f32 %v630_v35 }
 0x34a   :  { %v635_v36 = vpack.c.bf16 %v633_v33, %v633_v33 }
 0x34c   :  { %1361 = vmatmul.msk.bf16.vlgmr.msra.gmra.mxu2 %vm495_vm2, %v635_v36  ;;  %v1510_v36 = vld [vmem:[#allocation12 + $0x10] sm:$0xff] }
 0x34f   :  { %v1567_v37 = vpop.eup %1566 }
 0x350   :  { %v634_v38 = vmul.f32 %v1567_v37, %v1551_v61  ;;  %v758_v39 = vpop.xlane.xlu1 %757  ;;  %v1509_v37 = vld [vmem:[#allocation12 + $0x8] sm:$0xff] }
 0x351   :  { %1568 = vrcp.f32 %v758_v39  ;;  %v1523_v39 = vld [vmem:[#allocation14 + $0x38] sm:$0xff] }
 0x352   :  { %v636_v40 = vpack.c.bf16 %v634_v38, %v634_v38  ;;  %v1508_v38 = vld [vmem:[#allocation12] sm:$0xff] }
 0x353   :  { %v790_v41 = vpop.permute.xlu0 %789 }
 0x354   :  { %v795_v42 = vsel %vm523_vm0, %v790_v41, 0  ;;  %1362 = vmatmul.msk.bf16.vlgmr.msrb.gmra.mxu3 %vm495_vm2, %v636_v40  ;;  %v1522_v40 = vld [vmem:[#allocation14 + $0x30] sm:$0xff]  ;;  %v1521_v41 = vld [vmem:[#allocation14 + $0x28] sm:$0xff] }
 0x355   :  { %804 = vmatpush.bf16.msra.mxu3 %v795_v42  ;;  %v1520_v42 = vld [vmem:[#allocation14 + $0x20] sm:$0xff] }
 0x357   :  { %v1569_v43 = vpop.eup %1568 }
 0x358   :  { %v764_v44 = vmul.f32 %v1569_v43, %v1553_v2 }
 0x35a   :  { %v766_v45 = vpack.c.bf16 %v764_v44, %v764_v44  ;;  %v1541_v44 = vld [vmem:[%s2008_s6] ss:$0 sm:$0xff] }
 0x35c   :  { %v761_v46 = vpop.xlane.xlu1 %760  ;;  %1365 = vmatmul.msk.bf16.vlgmr.msrb.gmra.mxu2 %vm495_vm2, %v766_v45 }
 0x35d   :  { %1570 = vrcp.f32 %v761_v46 }
 0x360   :  { %v883_v52 = vpop.xlane.xlu2 %882 }
 0x361   :  { %1572 = vrcp.f32 %v883_v52  ;;  %v1516_v52 = vld [vmem:[#allocation14] sm:$0xff] }
 0x363   :  { %v1571_v48 = vpop.eup %1570 }
 0x364   :  { %v765_v49 = vmul.f32 %v1571_v48, %v1559_v18  ;;  %v536_v50 = vpop.f32.mrf.mxu2  ;;  %v1505_v18 = vld [vmem:[#allocation11 + $0x28] sm:$0xff] }
 0x365   :  { %559 = vst.msk [vmem:[#allocation2] sm:$0xff] %vm454_vm1, %v536_v50  ;;  %v555_v51 = vpop.f32.mrf.mxu3  ;;  %1019 = vmatpush.bf16.msra.mxu0 %v1505_v18  ;;  %v1519_v50 = vld [vmem:[#allocation14 + $0x18] sm:$0xff] }
 0x366   :  { %v767_v47 = vpack.c.bf16 %v765_v49, %v765_v49  ;;  %560 = vst.msk [vmem:[#allocation2 + $0x8] sm:$0xff] %vm454_vm1, %v555_v51  ;;  %v1518_v51 = vld [vmem:[#allocation14 + $0x10] sm:$0xff] }
 0x367   :  { %v1573_v55 = vpop.eup %1572 }
 0x368   :  { %1366 = vmatmul.msk.bf16.vlgmr.msra.gmra.mxu3 %vm495_vm2, %v767_v47  ;;  %v889_v56 = vmul.f32 %v1573_v55, %v1561_v22  ;;  %v1502_v22 = vld [vmem:[#allocation11 + $0x10] sm:$0xff]  ;;  %v1517_v47 = vld [vmem:[#allocation14 + $0x8] sm:$0xff] }
 0x369   :  { %1020 = vmatpush.bf16.msra.mxu0 %v1504_v19 }
 0x36a   :  { %v891_v34 = vpack.c.bf16 %v889_v56, %v889_v56 }
 0x36c   :  { %v538_v53 = vpop.f32.mrf.mxu2 }
 0x36d   :  { %v557_v54 = vpop.f32.mrf.mxu3  ;;  %1021 = vmatpush.bf16.msra.mxu0 %v1503_v21 }
 0x36e   :  { %v1542_v54 = vld [vmem:[%s2010_s8] ss:$0 sm:$0xff]  ;;  %s1207_s8 = sshll.u32 %s2013_s11, 4  ;;  %s1208_s8 = int_to_ptr.hbm [resolvable:$true] %s1207_s8 }
 0x371   :  { %1022 = vmatpush.bf16.msra.mxu0 %v1502_v22 }
 0x374   :  { %v894_v57 = vpop.permute.xlu1 %893 }
 0x375   :  { %v899_v58 = vsel %vm523_vm0, %v894_v57, 0  ;;  %1023 = vmatpush.bf16.msra.mxu0 %v1501_v24 }
 0x376   :  { %908 = vmatpush.bf16.msra.mxu2 %v899_v58 }
 0x379   :  { %1369 = vmatmul.msk.bf16.vlgmr.msra.gmra.mxu2 %vm495_vm2, %v891_v34  ;;  %1024 = vmatpush.bf16.msra.mxu0 %v1500_v25 }
 0x37a   :  { %1185 = vmatpush.bf16.msrb.mxu2 %v1523_v39 }
 0x37c   :  { %v915_v59 = vpop.permute.xlu1 %914 }
 0x37d   :  { %v920_v60 = vsel %vm523_vm0, %v915_v59, 0 }
 0x37e   :  { %929 = vmatpush.bf16.msrb.mxu3 %v920_v60  ;;  %1186 = vmatpush.bf16.msrb.mxu2 %v1522_v40  ;;  %v1543_v60 = vld [vmem:[%s2012_s10] ss:$0 sm:$0xff] }
 0x382   :  { %1187 = vmatpush.bf16.msrb.mxu2 %v1521_v41 }
 0x386   :  { %1188 = vmatpush.bf16.msrb.mxu2 %v1520_v42 }
 0x38a   :  { %1189 = vmatpush.bf16.msrb.mxu2 %v1519_v50 }
 0x38e   :  { %v886_v61 = vpop.xlane.xlu0 %885  ;;  %1190 = vmatpush.bf16.msrb.mxu2 %v1518_v51 }
 0x38f   :  { %1574 = vrcp.f32 %v886_v61 }
 0x392   :  { %1191 = vmatpush.bf16.msrb.mxu2 %v1517_v47 }
 0x395   :  { %v1575_v62 = vpop.eup %1574 }
 0x396   :  { %v890_v63 = vmul.f32 %v1575_v62, %v1563_v29  ;;  %v1512_v29 = vld [vmem:[#allocation12 + $0x20] sm:$0xff]  ;;  %1192 = vmatpush.bf16.msrb.mxu2 %v1516_v52 }
 0x397   :  { %1103 = vmatpush.bf16.msrb.mxu1 %v1512_v29 }
 0x398   :  { %v892_v0 = vpack.c.bf16 %v890_v63, %v890_v63 }
 0x39a   :  { %1370 = vmatmul.msk.bf16.vlgmr.msrb.gmra.mxu3 %vm495_vm2, %v892_v0 }
 0x39b   :  { %1104 = vmatpush.bf16.msrb.mxu1 %v1511_v30 }
 0x39f   :  { %1105 = vmatpush.bf16.msrb.mxu1 %v1510_v36 }
 0x3a3   :  { %1106 = vmatpush.bf16.msrb.mxu1 %v1509_v37 }
 0x3a7   :  { %1107 = vmatpush.bf16.msrb.mxu1 %v1508_v38 }
 0x3cf   :  { %v657_v1 = vpop.f32.mrf.mxu2 }
 0x3d0   :  { %687 = vrot.lane.b32.xlu1 %v657_v1, %s1790_s4 }
 0x3d7   :  { %v659_v2 = vpop.f32.mrf.mxu2  ;;  %v681_v3 = vpop.f32.mrf.mxu3 }
 0x3d8   :  { %689 = vrot.lane.b32.xlu2 %v681_v3, %s1790_s4 }
 0x3df   :  { %v683_v4 = vpop.f32.mrf.mxu3  ;;  %v785_v5 = vpop.f32.mrf.mxu2 }
 0x3e0   :  { %812 = vrot.lane.b32.xlu1 %v785_v5, %s1779_s25 }
 0x3e7   :  { %v787_v6 = vpop.f32.mrf.mxu2 }
 0x3eb   :  { %v806_v7 = vpop.f32.mrf.mxu3 }
 0x3ec   :  { %814 = vrot.lane.b32.xlu0 %v806_v7, %s1779_s25 }
 0x3f3   :  { %v808_v8 = vpop.f32.mrf.mxu3 }
 0x3fc   :  { %v910_v9 = vpop.f32.mrf.mxu2 }
 0x3fd   :  { %937 = vrot.lane.b32.xlu1 %v910_v9, %s1789_s26 }
 0x404   :  { %v912_v10 = vpop.f32.mrf.mxu2 }
 0x41d   :  { %v931_v11 = vpop.f32.mrf.mxu3 }
 0x41e   :  { %939 = vrot.lane.b32.xlu1 %v931_v11, %s1789_s26 }
 0x425   :  { %v933_v12 = vpop.f32.mrf.mxu3 }
 0x432   :  { %v690_v13 = vpop.permute.xlu2 %689 }
 0x433   :  { %695 = vst.msk [vmem:[#allocation2 + $0x8] sm:$0xff] %vm693_vm3, %v690_v13 }
 0x442   :  { %v688_v14 = vpop.permute.xlu1 %687 }
 0x443   :  { %694 = vst.msk [vmem:[#allocation2] sm:$0xff] %vm693_vm3, %v688_v14 }
 0x452   :  { %v813_v16 = vpop.permute.xlu1 %812 }
 0x453   :  { %819 = vst.msk [vmem:[#allocation2] sm:$0xff] %vm818_vm4, %v813_v16 }
 0x45e   :  { %v815_v20 = vpop.permute.xlu0 %814 }
 0x45f   :  { %820 = vst.msk [vmem:[#allocation2 + $0x8] sm:$0xff] %vm818_vm4, %v815_v20 }
 0x46f   :  { %v938_v23 = vpop.permute.xlu1 %937 }
 0x470   :  { %944 = vst.msk [vmem:[#allocation2] sm:$0xff] %vm943_vm5, %v938_v23 }
 0x477   :  { %v946_v32 = vld [vmem:[#allocation2] sm:$0xff] }
 0x490   :  { %v940_v31 = vpop.permute.xlu1 %939 }
 0x491   :  { %945 = vst.msk [vmem:[#allocation2 + $0x8] sm:$0xff] %vm943_vm5, %v940_v31 }
 0x498   :  { %v947_v33 = vld [vmem:[#allocation2 + $0x8] sm:$0xff] }
 0x499   :  { %v948_v35 = vpack.c.bf16 %v947_v33, %v946_v32 }
 0x49b   :  { %1025 = vmatmul.bf16.vlgmr.msra.gmra.mxu0 %v948_v35 }
 0x518   :  { %v1026_v43 = vpop.f32.mrf.mxu0 }
 0x519   :  { %v1027_v46 = vadd.f32 %v1541_v44, %v1026_v43 }
 0x520   :  { %v1028_v45 = vpop.f32.mrf.mxu0 }
 0x521   :  { %v1029_v48 = vadd.f32 %v1541_v44, %v1028_v45 }
 0x523   :  { %v1031_v49 = vpack.c.bf16 %v1029_v48, %v1027_v46 }
 0x525   :  { %1108 = vmatmul.bf16.vlgmr.msrb.gmra.mxu1 %v1031_v49 }
 0x5a2   :  { %v1109_v53 = vpop.f32.mrf.mxu1 }
 0x5a3   :  { %v1110_v55 = vadd.f32 %v1542_v54, %v1109_v53 }
 0x5a5   :  { %v1114_v58 = vmax.f32 %v1110_v55, 0.0 }
 0x5aa   :  { %v1111_v56 = vpop.f32.mrf.mxu1 }
 0x5ab   :  { %v1112_v57 = vadd.f32 %v1542_v54, %v1111_v56 }
 0x5ad   :  { %v1115_v34 = vmax.f32 %v1112_v57, 0.0 }
 0x5af   :  { %v1116_v59 = vpack.c.bf16 %v1115_v34, %v1114_v58 }
 0x5b1   :  { %1193 = vmatmul.bf16.vlgmr.msrb.gmra.mxu2 %v1116_v59 }
 0x634   :  { %v1194_v61 = vpop.f32.mrf.mxu2 }
 0x635   :  { %v1195_v62 = vadd.f32 %v1543_v60, %v1194_v61 }
 0x637   :  { %1199 = vst [vmem:[#allocation15] sm:$0xff] %v1195_v62 }
 0x63c   :  { %v1196_v63 = vpop.f32.mrf.mxu2 }
 0x63d   :  { %v1197_v0 = vadd.f32 %v1543_v60, %v1196_v63 }
 0x63f   :  { %1200 = vst [vmem:[#allocation15 + $0x8] sm:$0xff] %v1197_v0 }
 0x640   :  { %1213 = dma.vmem_to_hbm [thread:$0]  %s1206_s18, 256, %s1208_s8, [#allocation5], %s1792_s21, %s1792_s21, %s1793_s22  }
 0x641   :  { %1776 = dma.done.wait [#allocation5], 256  }
 0x642   :  { %1777 = vsyncadd [#allocation5], 4294967040 }
 0x643   :  { %1218 = vsyncpa [#allocation4], 1 }
 0x644   :  { %1219 = vsyncpa [#allocation7], 1 }
 0x645   :  { %1220 = vsyncpa [#allocation10], 1 }
 0x646   :  { %1221 = vsyncpa [#allocation13], 1 }
 0x647   :  { %1222 = vsyncpa [#allocation5], 1 }

</bundles_post_ra>
